<compile_context>
chip_gen: v7x
topology: tpu7x:2x2x1
jax: 0.10.0
libtpu: 0.0.40
codegen_flags: <defaults>
</compile_context>

<pallas_src>
import jax
import jax.numpy as jnp
from jax.experimental import pallas as pl
from jax.experimental.pallas import tpu as pltpu


def adanorm_kernel(x_ref, mod_ref, o_ref):
    # x_ref:   (seq_tile, D) tile of one batch row's sequence
    # mod_ref: (2, D) fp32 per-batch [shift ; 1+scale]
    # o_ref:   (seq_tile, D) output tile

    # --- Fp32LayerNorm over last dim, no affine, eps=1e-6 (centered two-pass
    #     for strict parity with the PyTorch reference) ---
    x = x_ref[...].astype(jnp.float32)
    mean = jnp.mean(x, axis=-1, keepdims=True)
    xc = x - mean
    var = jnp.mean(xc * xc, axis=-1, keepdims=True)
    # PyTorch Fp32LayerNorm casts back to x.dtype; modulate then promotes to fp32.
    xn = (xc * jax.lax.rsqrt(var + 1e-6)).astype(x_ref.dtype).astype(jnp.float32)

    # --- modulate: x * (1 + scale) + shift  (per-batch rows broadcast over seq) ---
    shift = mod_ref[pl.ds(0, 1), :]    # (1, D)
    scale1 = mod_ref[pl.ds(1, 1), :]   # (1, D)  == 1 + scale
    o_ref[...] = (xn * scale1 + shift).astype(o_ref.dtype)


def _vmem_config():
    """Generation-aware (tile byte budget, vmem_limit_bytes)."""
    try:
        cap = pltpu.get_tpu_info().vmem_capacity_bytes
    except Exception:
        cap = 64 * 1024 * 1024  # conservative fallback
    if cap >= 100 * 1024 * 1024:
        # v5e / v6e: 128 MiB VMEM per core -> big slabs are free.
        return 40 * 1024 * 1024, 96 * 1024 * 1024
    # v7x: 64 MiB physical VMEM per TensorCore -> budget leaves headroom for
    # the fp32 elementwise temporaries around the two reductions.
    return 20 * 1024 * 1024, 44 * 1024 * 1024


def _pick_seq_tile(N, D, x_dtype, out_dtype, budget, min_inner_tiles=1):
    """Largest sequence tile whose double-buffered in+out slabs fit `budget`."""
    x_bytes = jnp.dtype(x_dtype).itemsize
    o_bytes = jnp.dtype(out_dtype).itemsize
    row_bytes = D * (x_bytes + o_bytes)
    # Sublane packing: 8 for 32-bit, 16 for 16-bit, 32 for 8-bit dtypes.
    sub = {4: 8, 2: 16, 1: 32}.get(x_bytes, 8)

    # Byte-based cap only (no fixed row cap): double-buffered input + output.
    tile = max(sub, (budget // (2 * row_bytes) // sub) * sub)

    # Make sure the inner grid axis has enough steps to feed both v7x cores.
    if min_inner_tiles > 1:
        tile = min(tile, max(sub, -(-N // min_inner_tiles)))

    if N <= tile:
        return N  # single full-dim block (always layout-legal)

    # Prefer a divisor of N that is a multiple of the sublane pack -> every
    # store is unmasked and the pipeline is uniform.
    t = (tile // sub) * sub
    while t >= sub:
        if N % t == 0:
            return t
        t -= sub

    # Fall back to a balanced split rounded to the sublane pack (ragged last
    # block: padding rows are masked on store, benign).
    n_tiles = -(-N // tile)
    balanced = (-(-N // n_tiles) + sub - 1) // sub * sub
    return min(tile, max(sub, balanced))


def adanorm(x, c, W, b, *, seq_tile=None, out_dtype=jnp.float32):
    B, N, D = x.shape
    assert c.shape == (B, D)
    assert W.shape == (D, 2 * D)

    # --- adaLN conditioning, hoisted out of the kernel (plain JAX / XLA) ---
    cf = c.astype(jnp.float32)
    silu_c = cf * jax.nn.sigmoid(cf)
    mod = silu_c @ W.astype(jnp.float32) + b.astype(jnp.float32).reshape(1, 2 * D)
    shift = mod[:, :D]                          # (B, D) fp32
    scale1 = 1.0 + mod[:, D:]                   # (B, D) fp32, "1 + scale" folded once
    mod_stacked = jnp.stack([shift, scale1], axis=1)  # (B, 2, D) fp32

    budget, vmem_limit = _vmem_config()
    if seq_tile is None:
        min_inner = 2 if B == 1 else 1
        seq_tile = _pick_seq_tile(N, D, x.dtype, out_dtype, budget, min_inner)

    grid = (B, pl.cdiv(N, seq_tile))

    x_bytes = jnp.dtype(x.dtype).itemsize
    o_bytes = jnp.dtype(out_dtype).itemsize
    cost = pl.CostEstimate(
        flops=8 * B * N * D,
        transcendentals=B * N,
        bytes_accessed=B * N * D * (x_bytes + o_bytes) + B * 2 * D * 4,
    )

    return pl.pallas_call(
        adanorm_kernel,
        out_shape=jax.ShapeDtypeStruct((B, N, D), out_dtype),
        grid_spec=pltpu.PrefetchScalarGridSpec(
            num_scalar_prefetch=0,
            grid=grid,
            in_specs=[
                # x tile: batch dim squeezed -> lane-dense (seq_tile, D) slab
                pl.BlockSpec((None, seq_tile, D), lambda bi, i: (bi, i, 0)),
                # stacked [shift ; 1+scale]: one full-dim (2, D) block per batch
                pl.BlockSpec((None, 2, D), lambda bi, i: (bi, 0, 0)),
            ],
            out_specs=pl.BlockSpec((None, seq_tile, D), lambda bi, i: (bi, i, 0)),
        ),
        compiler_params=pltpu.CompilerParams(
            dimension_semantics=("parallel", "parallel"),
            vmem_limit_bytes=vmem_limit,
        ),
        cost_estimate=cost,
    )(x, mod_stacked)


def adanorm_ref(x, c, W, b):
    # Pure-JAX reference mirroring the PyTorch forward.
    D = x.shape[-1]
    cf = c.astype(jnp.float32)
    silu_c = cf * jax.nn.sigmoid(cf)
    mod = silu_c @ W.astype(jnp.float32) + b.astype(jnp.float32)
    shift, scale = mod[:, :D], mod[:, D:]
    xf = x.astype(jnp.float32)
    mean = xf.mean(-1, keepdims=True)
    var = ((xf - mean) ** 2).mean(-1, keepdims=True)
    xn = ((xf - mean) / jnp.sqrt(var + 1e-6)).astype(x.dtype).astype(jnp.float32)
    return xn * (1.0 + scale[:, None, :]) + shift[:, None, :]


if __name__ == "__main__":
    B, N, D = 2, 16, 32

    key = jax.random.PRNGKey(0)
    kx, kc, kw, kb = jax.random.split(key, 4)

    x = jax.random.normal(kx, (B, N, D), dtype=jnp.float32)
    c = jax.random.normal(kc, (B, D), dtype=jnp.float32)
    # Deterministic synthetic Linear(dim, 2*dim) params (PyTorch weight is (2D, D);
    # we store its transpose (D, 2D) so out = silu(c) @ W + b).
    W = jax.random.normal(kw, (D, 2 * D), dtype=jnp.float32) * (1.0 / jnp.sqrt(D))
    b = jax.random.normal(kb, (2 * D,), dtype=jnp.float32) * 0.02

    # Default fp32-output path (strict PyTorch-promotion parity).
    out = adanorm(x, c, W, b)
    out = jax.block_until_ready(out)

    ref = adanorm_ref(x, c, W, b)
    assert out.shape == (B, N, D) and out.dtype == jnp.float32
    assert jnp.allclose(out, ref, atol=1e-4, rtol=1e-4), float(jnp.max(jnp.abs(out - ref)))

    # Optional reduced-traffic bf16 path (bf16 in, bf16 out): exercise + loose check.
    xb = x.astype(jnp.bfloat16)
    out_bf16 = jax.block_until_ready(adanorm(xb, c, W, b, out_dtype=jnp.bfloat16))
    ref_bf16 = adanorm_ref(xb, c, W, b)
    assert out_bf16.shape == (B, N, D) and out_bf16.dtype == jnp.bfloat16
    assert jnp.allclose(out_bf16.astype(jnp.float32), ref_bf16, atol=1e-1, rtol=1e-1)

    print("KERNEL_OK")
</pallas_src>

<mosaic_0001>
module attributes {stable_mosaic.version = 11 : i64} {
  func.func @adanorm_kernel(%arg0: i32, %arg1: i32, %arg2: memref<1x16x32xf32, #tpu.memory_space<vmem>>, %arg3: memref<1x2x32xf32, #tpu.memory_space<vmem>>, %arg4: memref<1x16x32xf32, #tpu.memory_space<vmem>>) attributes {dimension_semantics = [#tpu.dimension_semantics<parallel>, #tpu.dimension_semantics<parallel>], iteration_bounds = array<i64: 2, 1>, scalar_prefetch = 0 : i64, scratch_operands = 0 : i64, tpu.core_type = #tpu.core_type<tc>, window_params = [{transform_indices = @transform_0, window_bounds = array<i64: 1, 16, 32>}, {transform_indices = @transform_1, window_bounds = array<i64: 1, 2, 32>}, {transform_indices = @transform_2, window_bounds = array<i64: 1, 16, 32>}]} {
    %c0 = arith.constant 0 : index
    %c0_0 = arith.constant 0 : index
    %c0_1 = arith.constant 0 : index
    %0 = vector.load %arg2[%c0, %c0_0, %c0_1] : memref<1x16x32xf32, #tpu.memory_space<vmem>>, vector<1x16x32xf32>
    %1 = vector.shape_cast %0 : vector<1x16x32xf32> to vector<16x32xf32>
    %cst = arith.constant dense<0.000000e+00> : vector<16xf32>
    %2 = vector.multi_reduction <add>, %1, %cst [1] : vector<16x32xf32> to vector<16xf32>
    %3 = vector.shape_cast %2 : vector<16xf32> to vector<16x1xf32>
    %cst_2 = arith.constant 3.200000e+01 : f32
    %4 = vector.broadcast %cst_2 : f32 to vector<16x1xf32>
    %5 = arith.divf %3, %4 : vector<16x1xf32>
    %6 = vector.broadcast %5 : vector<16x1xf32> to vector<16x32xf32>
    %7 = arith.subf %1, %6 : vector<16x32xf32>
    %8 = arith.mulf %7, %7 : vector<16x32xf32>
    %cst_3 = arith.constant dense<0.000000e+00> : vector<16xf32>
    %9 = vector.multi_reduction <add>, %8, %cst_3 [1] : vector<16x32xf32> to vector<16xf32>
    %10 = vector.shape_cast %9 : vector<16xf32> to vector<16x1xf32>
    %cst_4 = arith.constant 3.200000e+01 : f32
    %11 = vector.broadcast %cst_4 : f32 to vector<16x1xf32>
    %12 = arith.divf %10, %11 : vector<16x1xf32>
    %cst_5 = arith.constant 9.99999997E-7 : f32
    %13 = vector.broadcast %cst_5 : f32 to vector<16x1xf32>
    %14 = arith.addf %12, %13 : vector<16x1xf32>
    %15 = math.rsqrt %14 : vector<16x1xf32>
    %16 = vector.broadcast %15 : vector<16x1xf32> to vector<16x32xf32>
    %17 = arith.mulf %7, %16 : vector<16x32xf32>
    %c0_6 = arith.constant 0 : index
    %c0_7 = arith.constant 0 : index
    %c0_8 = arith.constant 0 : index
    %18 = vector.load %arg3[%c0_6, %c0_7, %c0_8] : memref<1x2x32xf32, #tpu.memory_space<vmem>>, vector<1x1x32xf32>
    %19 = vector.shape_cast %18 : vector<1x1x32xf32> to vector<1x32xf32>
    %c0_9 = arith.constant 0 : index
    %c1 = arith.constant 1 : index
    %c0_10 = arith.constant 0 : index
    %20 = vector.load %arg3[%c0_9, %c1, %c0_10] : memref<1x2x32xf32, #tpu.memory_space<vmem>>, vector<1x1x32xf32>
    %21 = vector.shape_cast %20 : vector<1x1x32xf32> to vector<1x32xf32>
    %22 = vector.broadcast %21 : vector<1x32xf32> to vector<16x32xf32>
    %23 = arith.mulf %17, %22 : vector<16x32xf32>
    %24 = vector.broadcast %19 : vector<1x32xf32> to vector<16x32xf32>
    %25 = arith.addf %23, %24 : vector<16x32xf32>
    %c0_11 = arith.constant 0 : index
    %c0_12 = arith.constant 0 : index
    %c0_13 = arith.constant 0 : index
    %26 = vector.load %arg4[%c0_11, %c0_12, %c0_13] : memref<1x16x32xf32, #tpu.memory_space<vmem>>, vector<1x16x32xf32>
    %27 = vector.shape_cast %26 : vector<1x16x32xf32> to vector<16x32xf32>
    %28 = vector.shape_cast %25 : vector<16x32xf32> to vector<1x16x32xf32>
    tpu.vector_store %arg4[%c0_11, %c0_12, %c0_13], %28 {strides = array<i32>} : memref<1x16x32xf32, #tpu.memory_space<vmem>>, vector<1x16x32xf32>,
    return
  }
  func.func @transform_0(%arg0: i32, %arg1: i32) -> (i32, i32, i32) {
    %c0_i32 = arith.constant 0 : i32
    %c0_i32_0 = arith.constant 0 : i32
    return %arg0, %arg1, %c0_i32 : i32, i32, i32
  }
  func.func @transform_1(%arg0: i32, %arg1: i32) -> (i32, i32, i32) {
    %c0_i32 = arith.constant 0 : i32
    %c0_i32_0 = arith.constant 0 : i32
    %c0_i32_1 = arith.constant 0 : i32
    return %arg0, %c0_i32, %c0_i32_0 : i32, i32, i32
  }
  func.func @transform_2(%arg0: i32, %arg1: i32) -> (i32, i32, i32) {
    %c0_i32 = arith.constant 0 : i32
    %c0_i32_0 = arith.constant 0 : i32
    return %arg0, %arg1, %c0_i32 : i32, i32, i32
  }
}

</mosaic_0001>

<bundles_post_ra>
// kernel: tpu_custom_call.1
= control target key start
LH: loop header
LB: loop body
LE: loop exit
PB: predicated region body
PF: predicated region fallthrough
CT: control target
= control target key end

     0   :  { %7 = vsyncpa [#allocation3], 0  ;;  %s889_s0 = inlined_call_operand.hbm [shape: f32[2,16,32], index: 0, kind: input, shape index: {}]   ;;  %s890_s1 = inlined_call_operand.hbm [shape: f32[2,2,32], index: 1, kind: input, shape index: {}]   ;;  %s891_s2 = inlined_call_operand.hbm [shape: f32[2,16,32], index: 2, kind: output, shape index: {}]  }
   0x1   :  { %9 = vsyncpa [#allocation3 + $0x1], 0 }
   0x2   :  { %10 = vsyncpa [#allocation6], 0 }
   0x3   :  { %12 = vsyncpa [#allocation6 + $0x1], 0 }
   0x4   :  { %13 = vsyncpa [#allocation4], 0 }
   0x5   :  { %15 = vsyncpa [#allocation4 + $0x1], 0  ;;  %s658_s9 = smov 0   ;;  %s660_s10 = smov 0  }
   0x6   :  { %s662_s11 = smov 0   ;;  %s664_s12 = smov 0  }
   0x7   :  { %s666_s13 = smov 0   ;;  %s668_s14 = smov 0  }
   0x8 LB: > { %s391_s15 = sadd.s32 4294967295, %s634_s14   ;;  %s392_s16 = sadd.s32 4294967294, %s634_s14   ;;  %s634_s14 = sphi %s668_s14, %s21_s14   ;;  %s630_s13 = sphi %s666_s13, %s910_s13   ;;  %s626_s12 = sphi %s664_s12, %s909_s12   ;;  %s622_s11 = sphi %s662_s11, %s908_s11   ;;  %s618_s10 = sphi %s660_s10, %s907_s10   ;;  %s614_s9 = sphi %s658_s9, %s906_s9  }
   0x9   : > { %s33_s17 = sadd.s32 1, %s630_s13  ;;  %s42_s18 = sadd.s32 1, %s622_s11 }
   0xa   : > { %p35_p0 = scmp.ge.s32.totalorder %s33_s17, 2  ;;  %p49_p1 = scmp.ne.s32.totalorder %s622_s11, %s618_s10 }
   0xb   : > { %p50_p2 = scmp.eq.s32.totalorder %s634_s14, 0  ;;  %p55_p3 = scmp.ne.s32.totalorder %s618_s10, %s614_s9 }
   0xc   : > { %s912_s17 = smov (%p35_p0, %s33_s17), 0  ;;  %p56_p5 = scmp.eq.s32.totalorder %s391_s15, 0 }
   0xd   : > { %p699_p4 = por %p50_p2, %p49_p1  ;;  %s37_s20 = ssub.s32 %s630_s13, %s912_s17 }
   0xe   : > { %p107_p6 = scmp.eq.s32.totalorder %s391_s15, 1  ;;  %p40_p7 = scmp.eq.s32.totalorder %s37_s20, 0 }
   0xf   : > { %p705_p8 = por %p56_p5, %p55_p3  ;;  %p113_p10 = scmp.eq.s32.totalorder %s392_s16, 1 }
  0x10   : > { %p709_p9 = por %p107_p6, %p49_p1  ;;  %p430_p13 = scmp.lt.s32.totalorder %s634_s14, 2 }
  0x11   : > { %s895_s21 = scalar_select %p705_p8, 1, 0 }
  0x12   : > { %s896_s22 = scalar_select %p709_p9, 1, 0 }
  0x13   : > { %s714_s23 = scalar_select %p40_p7, %s622_s11, %s42_s18  }
  0x14   : > { %p716_p11 = por %p113_p10, %p55_p3  ;;  %s723_s25 = sand.u32 1, %s622_s11  }
  0x15   : > { %s395_s26 = sshll.u32 %s723_s25, 4  ;;  %s411_s27 = sshll.u32 %s630_s13, 8 }
  0x16   : > { %s897_s24 = scalar_select %p716_p11, 1, 0 }
  0x17   : > { %s730_s30 = scalar_lea.hbm %s889_s0, %s411_s27  ;;  %s137_s3 = scalar_lea.vmem [#allocation2], %s395_s26 }
  0x18   : > { %s146_s4 = sshll.u32 %s137_s3, 4  ;;  %p736_p0 = pnand %p430_p13, %p699_p4  ;;  %s732_s4 = int_to_ptr.vmem [resolvable:$true] %s146_s4 }
  0x19   : > { %s134_s6 = scalar_lea.sflag [#allocation3], %s723_s25  ;;  %s488_s7 = scalar_lea.hbm %s730_s30, 256 }
  0x1a   : > { %p489_p2 = scmp.ne.s32.totalorder %s730_s30, %s488_s7  ;;  %p490_p3 = pneg %p736_p0 }
  0x1b   : > { %s493_s16 = scalar_lea.hbm %s889_s0, 512  ;;  %p494_p4 = scmp.lt.u32.totalorder %s730_s30, %s889_s0 }
  0x1c   : > { %p491_p5 = pnand %p490_p3, %p489_p2  ;;  %p495_p7 = scmp.lt.u32.totalorder %s493_s16, %s488_s7 }
  0x1d   : > { %p497_p13 = scmp.lt.u32.totalorder %s488_s7, %s730_s30 }
  0x1e   : > { %p492_p6 = pneg %p491_p5  ;;  %p496_p10 = por %p495_p7, %p494_p4 }
  0x20   : > { %p498_p12 = por %p497_p13, %p496_p10 }
  0x22   : > { %p499_p1 = pnand %p498_p12, %p492_p6 }
  0x24   : > { %502 = shalt.err (!%p499_p1)
}
  0x25   : > { %s503_s20 = scalar_lea.vmem %s732_s4, 256  ;;  %s636_s26 = smov [#allocation2]  }
  0x26   : > { %p504_p2 = scmp.ne.s32.totalorder %s732_s4, %s503_s20  ;;  %s508_s27 = sshll.u32 %s636_s26, 4  ;;  %s509_s27 = int_to_ptr.vmem [resolvable:$false] %s508_s27 }
  0x27   : > { %s510_s28 = scalar_lea.vmem %s509_s27, 512  ;;  %p511_p9 = scmp.lt.s32.totalorder %s732_s4, %s509_s27 }
  0x28   : > { %p506_p5 = pnand %p504_p2, %p490_p3  ;;  %p512_p4 = scmp.lt.s32.totalorder %s510_s28, %s503_s20 }
  0x2a   : > { %p507_p11 = pneg %p506_p5  ;;  %p513_p7 = por %p512_p4, %p511_p9 }
  0x2c   : > { %p514_p10 = pnand %p513_p7, %p507_p11 }
  0x2e   : > { %517 = shalt.err (!%p514_p10)
}
  0x2f   : > { %s637_s29 = smov 128   ;;  %s638_s3 = smov 8  }
  0x30   : > { %422 = dma.hbm_to_vmem [thread:$0]  (!%p736_p0), %s730_s30, 256, %s732_s4, %s134_s6, %s637_s29, %s637_s29, %s638_s3  }
  0x31   : > { %p172_p12 = scmp.lt.s32.totalorder %s634_s14, 3  ;;  %s398_s7 = sshll.u32 %s723_s25, 1 }
  0x32   : > { %s399_s8 = sshll.u32 %s630_s13, 5  ;;  %p899_p9 = scmp.ge.s32.totalorder %s634_s14, 1 }
  0x33   : > { %s781_s19 = scalar_lea.hbm %s890_s1, %s399_s8  ;;  %s160_s20 = scalar_lea.vmem [#allocation5], %s398_s7 }
  0x34   : > { %p774_p11 = pnand %p899_p9, %p172_p12  ;;  %s167_s26 = sshll.u32 %s160_s20, 4  ;;  %s168_s26 = int_to_ptr.vmem [resolvable:$true] %s167_s26 }
  0x35   : > { %s157_s30 = scalar_lea.sflag [#allocation6], %s723_s25  ;;  %s518_s4 = scalar_lea.hbm %s781_s19, 32 }
  0x36   : > { %s900_s15 = scalar_select %p774_p11, 1, 0 }
  0x37   : > { %p519_p1 = scmp.ne.s32.totalorder %s781_s19, %s518_s4  ;;  %s523_s28 = scalar_lea.hbm %s890_s1, 64 }
  0x38   : > { %p524_p2 = scmp.lt.u32.totalorder %s781_s19, %s890_s1  ;;  %p525_p5 = scmp.lt.u32.totalorder %s523_s28, %s518_s4 }
  0x39   : > { %p521_p6 = pnand %p519_p1, %p490_p3  ;;  %p527_p7 = scmp.lt.u32.totalorder %s518_s4, %s781_s19 }
  0x3a   : > { %p526_p4 = por %p525_p5, %p524_p2 }
  0x3b   : > { %p522_p13 = pneg %p521_p6 }
  0x3c   : > { %p528_p10 = por %p527_p7, %p526_p4 }
  0x3e   : > { %p529_p12 = pnand %p528_p10, %p522_p13 }
  0x40   : > { %532 = shalt.err (!%p529_p12)
}
  0x41   : > { %s533_s25 = scalar_lea.vmem %s168_s26, 32  ;;  %s639_s7 = smov [#allocation5]  }
  0x42   : > { %p534_p9 = scmp.ne.s32.totalorder %s168_s26, %s533_s25  ;;  %s538_s8 = sshll.u32 %s639_s7, 4  ;;  %s539_s8 = int_to_ptr.vmem [resolvable:$false] %s538_s8 }
  0x43   : > { %s540_s16 = scalar_lea.vmem %s539_s8, 64  ;;  %p541_p8 = scmp.lt.s32.totalorder %s168_s26, %s539_s8 }
  0x44   : > { %p536_p1 = pnand %p534_p9, %p490_p3  ;;  %p542_p11 = scmp.lt.s32.totalorder %s540_s16, %s533_s25 }
  0x46   : > { %p537_p6 = pneg %p536_p1  ;;  %p543_p2 = por %p542_p11, %p541_p8 }
  0x48   : > { %p544_p5 = pnand %p543_p2, %p537_p6 }
  0x4a   : > { %547 = shalt.err (!%p544_p5)
}
  0x4b   : > { %425 = dma.hbm_to_vmem [thread:$0]  (!%p736_p0), %s781_s19, 32, %s168_s26, %s157_s30  }
  0x4c   : > { %p901_p13 = scmp.ne.s32.totalorder %s900_s15, 0 }
  0x4d   : > { %s806_s18 = sand.u32 (!%p901_p13), 1, %s618_s10   ;;  %p902_p8 = scmp.ne.s32.totalorder (!%p901_p13), %s895_s21, 0 }
  0x4e   : > { %176 = sbr.rel (%p901_p13) target bundleno = 422 (0x1a6), region = 28  ;;  %s401_s20 = sshll.u32 (!%p901_p13), %s806_s18, 4 }
  0x4f   : > { %s179_s4 = scalar_lea.sflag (!%p901_p13), [#allocation3], %s806_s18  ;;  %s182_s6 = scalar_lea.vmem (!%p901_p13), [#allocation2], %s401_s20 }
  0x55   : > { %601 = dma.done.wait (%p902_p8), %s179_s4, 256  }
  0x56   : > { %603 = vsyncadd (%p902_p8), %s179_s4, 4294967040  ;;  %s402_s5 = sshll.u32 %s806_s18, 1  ;;  %s188_s15 = scalar_lea.sflag [#allocation6], %s806_s18 }
  0x57   : > { %s818_s19 = scalar_lea.vmem [#allocation5], %s402_s5 }
  0x58   : > { %605 = dma.done.wait (%p902_p8), %s188_s15, 32  }
  0x59   : > { %607 = vsyncadd (%p902_p8), %s188_s15, 4294967264  ;;  %vm221_vm0 = vcmask 261120   ;;  %v219_v0 = vld [vmem:[%s182_s6] sm:$0xff]  ;;  %v220_v1 = vld [vmem:[%s182_s6 + $0x8] sm:$0xff]  ;;  %s412_s21 = sshll.u32 %s626_s12, 8  ;;  %s216_s26 = scalar_lea.vmem [#allocation7], %s401_s20 }
  0x5a   : > { %v222_v2 = vsel %vm221_vm0, %v219_v0, 0.0  ;;  %v225_v3 = vsel %vm221_vm0, %v220_v1, 0.0  ;;  %v404_v21 = vld [vmem:[%s818_s19 + $0x1] ss:$0 sm:$0xff]  ;;  %v405_v23 = vld [vmem:[%s818_s19] ss:$0 sm:$0xff]  ;;  %s837_s29 = scalar_lea.hbm %s891_s2, %s412_s21 }
  0x5b   : > { %223 = vadd.xlane.f32.xlu0 %v222_v2  ;;  %s281_s30 = sshll.u32 %s216_s26, 4  ;;  %s266_s12 = scalar_lea.sflag [#allocation4], %s806_s18  ;;  %s839_s30 = int_to_ptr.vmem [resolvable:$true] %s281_s30 }
  0x5c   : > { %s548_s3 = scalar_lea.vmem %s839_s30, 256  ;;  %p903_p3 = scmp.ne.s32.totalorder %s896_s22, 0 }
  0x5d   : > { %p549_p0 = scmp.ne.s32.totalorder %s839_s30, %s548_s3  ;;  %s640_s25 = smov [#allocation7]  }
  0x5e   : > { %s552_s7 = sshll.u32 %s640_s25, 4  ;;  %s553_s7 = int_to_ptr.vmem [resolvable:$false] %s552_s7 }
  0x5f   : > { %226 = vadd.xlane.f32.xlu0 %v225_v3  ;;  %p550_p11 = pnand %p549_p0, %p903_p3  ;;  %s554_s8 = scalar_lea.vmem %s553_s7, 512 }
  0x60   : > { %p555_p7 = scmp.lt.s32.totalorder %s839_s30, %s553_s7  ;;  %p556_p10 = scmp.lt.s32.totalorder %s554_s8, %s548_s3 }
  0x61   : > { %p551_p4 = pneg %p550_p11 }
  0x62   : > { %p557_p12 = por %p556_p10, %p555_p7 }
  0x64   : > { %p558_p9 = pnand %p557_p12, %p551_p4 }
  0xe8   : > { %v224_v4 = vpop.xlane.xlu0 %223 }
  0xe9   : > { %v229_v5 = vmul.f32 0.03125, %v224_v4 }
  0xeb   : > { %v231_v6 = vsub.f32 %v219_v0, %v229_v5 }
  0xec   : > { %v227_v7 = vpop.xlane.xlu0 %226 }
  0xed   : > { %v230_v8 = vmul.f32 0.03125, %v227_v7  ;;  %v233_v9 = vmul.f32 %v231_v6, %v231_v6 }
  0xef   : > { %v232_v10 = vsub.f32 %v220_v1, %v230_v8  ;;  %v235_v11 = vsel %vm221_vm0, %v233_v9, 0.0 }
  0xf0   : > { %236 = vadd.xlane.f32.xlu1 %v235_v11 }
  0xf1   : > { %v234_v12 = vmul.f32 %v232_v10, %v232_v10 }
  0xf3   : > { %v238_v13 = vsel %vm221_vm0, %v234_v12, 0.0 }
  0xf4   : > { %239 = vadd.xlane.f32.xlu1 %v238_v13 }
 0x17d   : > { %v237_v14 = vpop.xlane.xlu1 %236 }
 0x17e   : > { %v241_v15 = vmul.f32 0.03125, %v237_v14 }
 0x180   : > { %v243_v16 = vadd.f32 1e-06, %v241_v15 }
 0x181   : > { %v240_v17 = vpop.xlane.xlu1 %239 }
 0x182   : > { %484 = vrsqrt.f32 %v243_v16  ;;  %v242_v18 = vmul.f32 0.03125, %v240_v17 }
 0x184   : > { %v244_v19 = vadd.f32 1e-06, %v242_v18 }
 0x186   : > { %486 = vrsqrt.f32 %v244_v19 }
 0x18c   : > { %v485_v20 = vpop.eup %484 }
 0x18d   : > { %v247_v22 = vmul.f32 %v485_v20, %v231_v6 }
 0x18f   : > { %v255_v24 = vmul.f32 %v404_v21, %v247_v22 }
 0x190   : > { %v487_v25 = vpop.eup %486 }
 0x191   : > { %v261_v26 = vadd.f32 %v405_v23, %v255_v24  ;;  %v248_v27 = vmul.f32 %v487_v25, %v232_v10 }
 0x193   : > { %v256_v28 = vmul.f32 %v404_v21, %v248_v27  ;;  %263 = vst.msk [vmem:[%s216_s26] sm:$0xff] %vm221_vm0, %v261_v26 }
 0x195   : > { %v262_v29 = vadd.f32 %v405_v23, %v256_v28 }
 0x197   : > { %264 = vst.msk [vmem:[%s216_s26 + $0x8] sm:$0xff] %vm221_vm0, %v262_v29 }
 0x198   : > { %561 = shalt.err (!%p558_p9)
}
 0x199   : > { %s562_s16 = scalar_lea.hbm %s837_s29, 256  ;;  %s566_s6 = scalar_lea.hbm %s891_s2, 512 }
 0x19a   : > { %p563_p1 = scmp.ne.s32.totalorder %s837_s29, %s562_s16  ;;  %p567_p5 = scmp.lt.u32.totalorder %s837_s29, %s891_s2 }
 0x19b   : > { %p568_p13 = scmp.lt.u32.totalorder %s566_s6, %s562_s16  ;;  %p570_p0 = scmp.lt.u32.totalorder %s562_s16, %s837_s29 }
 0x19c   : > { %p564_p6 = pnand %p563_p1, %p903_p3 }
 0x19d   : > { %p569_p8 = por %p568_p13, %p567_p5 }
 0x19e   : > { %p565_p2 = pneg %p564_p6 }
 0x19f   : > { %p571_p11 = por %p570_p0, %p569_p8 }
 0x1a1   : > { %p572_p4 = pnand %p571_p11, %p565_p2 }
 0x1a3   : > { %575 = shalt.err (!%p572_p4)
}
 0x1a4   : > { %s641_s19 = smov 128   ;;  %s642_s21 = smov 8  }
 0x1a5   : > { %417 = dma.vmem_to_hbm [thread:$0]  (%p903_p3), %s839_s30, 256, %s837_s29, %s266_s12, %s641_s19, %s641_s19, %s642_s21  }
 0x1a6 PF: > { %s296_s26 = sand.u32 1, %s614_s9   ;;  %p904_p7 = scmp.ne.s32.totalorder %s897_s24, 0 }
 0x1a7   : > { %p905_p10 = scmp.ge.s32.totalorder %s634_s14, 2  ;;  %s297_s27 = scalar_lea.sflag [#allocation4], %s296_s26 }
 0x1a9   : > { %p427_p12 = pnand %p905_p10, %p904_p7 }
 0x1ab   : > { %609 = dma.done.wait (!%p427_p12), %s297_s27, 256  }
 0x1ac   : > { %611 = vsyncadd (!%p427_p12), %s297_s27, 4294967040  ;;  %s21_s14 = sadd.s32 1, %s634_s14   ;;  %s906_s9 = smov %s618_s10 }
 0x1ad   : > { %p18_p9 = scmp.ge.s32.totalorder %s21_s14, 4   ;;  %s907_s10 = smov %s622_s11 }
 0x1ae   : > { %s908_s11 = smov %s714_s23  ;;  %s909_s12 = smov %s630_s13 }
 0x1af   : > { %s910_s13 = smov %s912_s17  ;;  %20 = sbr.rel (!%p18_p9) target bundleno = 8 (0x8), region = 86 }
 0x1b6   :  { %302 = vsyncpa [#allocation3], 1 }
 0x1b7   :  { %304 = vsyncpa [#allocation3 + $0x1], 1 }
 0x1b8   :  { %305 = vsyncpa [#allocation6], 1 }
 0x1b9   :  { %307 = vsyncpa [#allocation6 + $0x1], 1 }
 0x1ba   :  { %308 = vsyncpa [#allocation4], 1 }
 0x1bb   :  { %310 = vsyncpa [#allocation4 + $0x1], 1 }

</bundles_post_ra>
